<compile_context>
chip_gen: v5e
topology: v5e:2x2
jax: 0.10.0
libtpu: 0.0.40
codegen_flags: <defaults>
</compile_context>

<pallas_src>
import jax
import jax.numpy as jnp
from jax.experimental import pallas as pl
from jax.experimental.pallas import tpu as pltpu

_LANES = 128
_SUBLANES = 8
# Below this many elements the kernel is pure launch/wrapper overhead; plain XLA wins.
_SMALL_INPUT_ELEMS = 128 * 1024
# Keep input+output double buffers <= ~12 MiB (v5e scoped-VMEM default is 16 MiB):
#   4 buffers * tb * 128 lanes * 4 B  <= 12 MiB  =>  tb <= 6144 rows.
_MAX_TILE_ROWS = 6144


def _affine_kernel(w_ref, b_ref, x_ref, o_ref):
    # Pure VPU path: scalar weight/bias read from SMEM, broadcast FMA over the
    # lane-dense (tb, 128) tile; stores are full-width unmasked vst.
    o_ref[...] = x_ref[...] * w_ref[0] + b_ref[0]


def linear_regression_forward(x, weight, bias, *, block_rows=4096, force_pallas=False):
    """Matches torch.nn.Linear(1, 1): y = x @ weight.T + bias, returns (B, 1) float32."""
    B, in_f = x.shape
    out_f = weight.shape[0]
    assert in_f == 1 and out_f == 1, "kernel is specialized for nn.Linear(1, 1)"

    n = B  # one feature -> one element per batch entry

    # Small-input bypass: a fused XLA elementwise affine beats any kernel launch here.
    if not force_pallas and n < _SMALL_INPUT_ELEMS:
        w = weight.reshape(()).astype(jnp.float32)
        b = bias.reshape(()).astype(jnp.float32)
        return x.astype(jnp.float32) * w + b

    # Scalar parameters -> 1-D SMEM arrays (scalar path, no padded VMEM tiles, no DMAs).
    w_smem = weight.reshape(1).astype(jnp.float32)
    b_smem = bias.reshape(1).astype(jnp.float32)

    # Lane-dense layout: flatten the batch into a (rows, 128) f32 slab so each tile is
    # one contiguous HBM DMA and output stores are unmasked full-width vst.
    flat = x.reshape(-1).astype(jnp.float32)
    rows = pl.cdiv(n, _LANES)

    # Tile sizing for a purely HBM-bandwidth-bound kernel:
    #   * default 4096 rows -> 2 MiB per tile (near HBM roofline on v5e/v6e/v7x)
    #   * keep >= 2 grid steps so both TensorCores participate on v7x
    #   * cap so double-buffered input+output stays under v5e's scoped-VMEM default
    tb = max(_SUBLANES, min(block_rows, rows))
    if rows > _SUBLANES:
        tb = min(tb, pl.cdiv(rows, 2))
    tb = min(tb, _MAX_TILE_ROWS)
    tb = max(_SUBLANES, (tb // _SUBLANES) * _SUBLANES)  # multiple of 8 sublanes

    # Single padding pass (pad directly to the final padded size; zero-padded tail
    # computes 0*w+b and is sliced off below).
    rows_padded = pl.cdiv(rows, tb) * tb
    padded_n = rows_padded * _LANES
    if padded_n != n:
        flat = jnp.pad(flat, (0, padded_n - n))
    slab = flat.reshape(rows_padded, _LANES)
    grid = (rows_padded // tb,)

    out_slab = pl.pallas_call(
        _affine_kernel,
        out_shape=jax.ShapeDtypeStruct((rows_padded, _LANES), jnp.float32),
        grid=grid,
        in_specs=[
            pl.BlockSpec(memory_space=pltpu.MemorySpace.SMEM),  # weight scalar
            pl.BlockSpec(memory_space=pltpu.MemorySpace.SMEM),  # bias scalar
            pl.BlockSpec((tb, _LANES), lambda i: (i, 0)),       # x tile (lane-dense)
        ],
        out_specs=pl.BlockSpec((tb, _LANES), lambda i: (i, 0)),
        # Donate the temporary padded slab as the output buffer (same shape/dtype):
        # removes the separate HBM output allocation / extra pass over the data.
        input_output_aliases={2: 0},
        compiler_params=pltpu.CompilerParams(
            dimension_semantics=("parallel",),  # shards grid across TCs on v7x
        ),
    )(w_smem, b_smem, slab)

    out = out_slab.reshape(-1)
    if padded_n != n:
        out = out[:n]
    return out.reshape(B, out_f)


if __name__ == "__main__":
    input_dim = 1
    output_dim = 1

    key = jax.random.PRNGKey(0)
    kx, kw, kb, kx2, kx3 = jax.random.split(key, 5)

    # Deterministic synthetic parameters (nn.Linear shapes: W (out,in), b (out,))
    weight = jax.random.normal(kw, (output_dim, input_dim), dtype=jnp.float32) * 0.5
    bias = jax.random.normal(kb, (output_dim,), dtype=jnp.float32) * 0.1

    # 1) Tiny batch through the Pallas kernel (forced) -- single grid step.
    x = jax.random.normal(kx, (8, input_dim), dtype=jnp.float32)
    out = jax.block_until_ready(
        linear_regression_forward(x, weight, bias, force_pallas=True)
    )
    ref = x @ weight.T + bias
    assert out.shape == (8, output_dim)
    assert jnp.allclose(out, ref, atol=1e-5, rtol=1e-5)

    # 2) Non-multiple-of-tile batch with a multi-step (grid > 1) pipeline.
    x2 = jax.random.normal(kx2, (3000, input_dim), dtype=jnp.float32)
    out2 = jax.block_until_ready(
        linear_regression_forward(x2, weight, bias, block_rows=8, force_pallas=True)
    )
    ref2 = x2 @ weight.T + bias
    assert out2.shape == (3000, output_dim)
    assert jnp.allclose(out2, ref2, atol=1e-5, rtol=1e-5)

    # 3) Default path: small inputs bypass the kernel (fused XLA affine).
    x3 = jax.random.normal(kx3, (300, input_dim), dtype=jnp.float32)
    out3 = jax.block_until_ready(linear_regression_forward(x3, weight, bias))
    ref3 = x3 @ weight.T + bias
    assert out3.shape == (300, output_dim)
    assert jnp.allclose(out3, ref3, atol=1e-5, rtol=1e-5)

    print("KERNEL_OK")
</pallas_src>

<mosaic_0001>
module attributes {stable_mosaic.version = 11 : i64} {
  func.func @_affine_kernel(%arg0: i32, %arg1: memref<1xf32, #tpu.memory_space<smem>>, %arg2: memref<1xf32, #tpu.memory_space<smem>>, %arg3: memref<8x128xf32, #tpu.memory_space<vmem>>, %arg4: memref<8x128xf32, #tpu.memory_space<vmem>>) attributes {dimension_semantics = [#tpu.dimension_semantics<parallel>], iteration_bounds = array<i64: 1>, scalar_prefetch = 0 : i64, scratch_operands = 0 : i64, tpu.core_type = #tpu.core_type<tc>, window_params = [{transform_indices = @transform_0, window_bounds = array<i64: 1>}, {transform_indices = @transform_1, window_bounds = array<i64: 1>}, {transform_indices = @transform_2, window_bounds = array<i64: 8, 128>}, {transform_indices = @transform_3, window_bounds = array<i64: 8, 128>}]} {
    %c0 = arith.constant 0 : index
    %c0_0 = arith.constant 0 : index
    %0 = vector.load %arg3[%c0, %c0_0] : memref<8x128xf32, #tpu.memory_space<vmem>>, vector<8x128xf32>
    %c0_1 = arith.constant 0 : index
    %1 = memref.load %arg1[%c0_1] : memref<1xf32, #tpu.memory_space<smem>>
    %2 = vector.broadcast %1 : f32 to vector<8x128xf32>
    %3 = arith.mulf %0, %2 : vector<8x128xf32>
    %c0_2 = arith.constant 0 : index
    %4 = memref.load %arg2[%c0_2] : memref<1xf32, #tpu.memory_space<smem>>
    %5 = vector.broadcast %4 : f32 to vector<8x128xf32>
    %6 = arith.addf %3, %5 : vector<8x128xf32>
    %c0_3 = arith.constant 0 : index
    %c0_4 = arith.constant 0 : index
    %7 = vector.load %arg4[%c0_3, %c0_4] : memref<8x128xf32, #tpu.memory_space<vmem>>, vector<8x128xf32>
    tpu.vector_store %arg4[%c0_3, %c0_4], %6 {strides = array<i32>} : memref<8x128xf32, #tpu.memory_space<vmem>>, vector<8x128xf32>,
    return
  }
  func.func @transform_0(%arg0: i32) -> i32 {
    %c0_i32 = arith.constant 0 : i32
    %c0_i32_0 = arith.constant 0 : i32
    return %c0_i32 : i32
  }
  func.func @transform_1(%arg0: i32) -> i32 {
    %c0_i32 = arith.constant 0 : i32
    %c0_i32_0 = arith.constant 0 : i32
    return %c0_i32 : i32
  }
  func.func @transform_2(%arg0: i32) -> (i32, i32) {
    %c0_i32 = arith.constant 0 : i32
    %c0_i32_0 = arith.constant 0 : i32
    return %arg0, %c0_i32 : i32, i32
  }
  func.func @transform_3(%arg0: i32) -> (i32, i32) {
    %c0_i32 = arith.constant 0 : i32
    %c0_i32_0 = arith.constant 0 : i32
    return %arg0, %c0_i32 : i32, i32
  }
}

</mosaic_0001>

<bundles_post_ra>
// kernel: tpu_custom_call.1
= control target key start
LH: loop header
LB: loop body
LE: loop exit
PB: predicated region body
PF: predicated region fallthrough
CT: control target
= control target key end

     0   :  { %10 = vsyncpa [#allocation5], 0  ;;  %s144_s0 = inlined_call_operand.<no memory space> [shape: f32[1], index: 0, kind: input, shape index: {}]   ;;  %s145_s1 = inlined_call_operand.<no memory space> [shape: f32[1], index: 1, kind: input, shape index: {}]   ;;  %s146_s2 = inlined_call_operand.hbm [shape: f32[8,128], index: 2, kind: input, shape index: {}, may-alias: {2,3}]   ;;  %s147_s3 = inlined_call_operand.hbm [shape: f32[8,128], index: 3, kind: output, shape index: {}, may-alias: {2,3}]  }
   0x1   :  { %11 = vsyncpa [#allocation6], 0  ;;  %s21_s14 = sshll.u32 %s146_s2, 4  ;;  %s110_s15 = smov [#allocation4]   ;;  %s22_s14 = int_to_ptr.hbm [resolvable:$true] %s21_s14 }
   0x2   :  { %s23_s16 = sshll.u32 %s110_s15, 4  ;;  %s24_s16 = int_to_ptr.vmem [resolvable:$true] %s23_s16 }
   0x3   :  { %26 = dma.hbm_to_vmem [thread:$0]  %s22_s14, 128, %s24_s16, [#allocation5]  }
   0x4   :  { %106 = dma.done.wait [#allocation5], 128  }
   0x5   :  { %107 = vsyncadd [#allocation5], 4294967168  ;;  %v33_v0 = vstv %s144_s0  ;;  %v31_v1 = vld [vmem:[#allocation4] sm:$0xff]  ;;  %v36_v2 = vstv %s145_s1  ;;  %s111_s21 = smov [#allocation7]   ;;  %s46_s24 = sshll.u32 %s147_s3, 4  ;;  %s47_s24 = int_to_ptr.hbm [resolvable:$true] %s46_s24 }
   0x6   :  { %s44_s22 = sshll.u32 %s111_s21, 4  ;;  %v34_v3 = vmul.f32 %v33_v0, %v31_v1  ;;  %s45_s22 = int_to_ptr.vmem [resolvable:$true] %s44_s22 }
   0x8   :  { %v37_v4 = vadd.f32 %v36_v2, %v34_v3 }
   0xa   :  { %38 = vst [vmem:[#allocation7] sm:$0xff] %v37_v4 }
   0xb   :  { %49 = dma.vmem_to_hbm [thread:$0]  %s45_s22, 128, %s47_s24, [#allocation6]  }
   0xc   :  { %108 = dma.done.wait [#allocation6], 128  }
   0xd   :  { %109 = vsyncadd [#allocation6], 4294967168 }
   0xe   :  { %54 = vsyncpa [#allocation5], 1 }
   0xf   :  { %55 = vsyncpa [#allocation6], 1 }

</bundles_post_ra>
